<compile_context>
chip_gen: v7x
topology: tpu7x:2x2x1
jax: 0.10.0
libtpu: 0.0.40
codegen_flags: <defaults>
</compile_context>

<pallas_src>
import jax
import jax.numpy as jnp
from jax.experimental import pallas as pl
from jax.experimental.pallas import tpu as pltpu

_LANE = 128


def _linear_dynamics_kernel(t_ref, x_ref, v_ref, o_ref):
    # t_ref: (1,) f32 scalar-prefetch parameter (SMEM).
    # x_ref, v_ref, o_ref: (tr, 128) VMEM tiles.
    t = t_ref[0]
    o_ref[...] = (x_ref[...] + v_ref[...] * t).astype(o_ref.dtype)


def _tpu_kind():
    try:
        return jax.devices()[0].device_kind.lower()
    except Exception:
        return ""


def linear_dynamics(x, v, time, *, use_pallas=None):
    """out = x + v * time, elementwise, scalar `time`."""
    assert x.shape == v.shape
    orig_shape = x.shape
    n = x.size
    out_dtype = jnp.result_type(x.dtype, v.dtype, jnp.float32)
    t = jnp.asarray(time, dtype=jnp.float32).reshape(1)

    # Small-size fallback: below ~256 KiB the pallas_call launch/pipeline
    # setup dwarfs the work; a fused 3-op XLA expression is strictly faster.
    if use_pallas is None:
        use_pallas = n * jnp.dtype(out_dtype).itemsize >= (1 << 18)

    rows = n // _LANE          # lane-aligned rows handled by the kernel
    main = rows * _LANE
    tail = n - main

    if (not use_pallas) or rows == 0:
        return (x + v * t[0]).astype(out_dtype).reshape(orig_shape)

    itemsize = jnp.dtype(x.dtype).itemsize
    sub = {4: 8, 2: 16, 1: 32}.get(itemsize, 8)

    x_flat = jnp.reshape(x, (-1,))
    v_flat = jnp.reshape(v, (-1,))
    if tail == 0:
        # Any n divisible by 128: pure reshape, zero extra HBM traffic.
        x2 = x_flat.reshape(rows, _LANE)
        v2 = v_flat.reshape(rows, _LANE)
    else:
        # Rare unaligned case: kernel runs on the aligned prefix; the <128
        # element tail is handled in plain JAX below.
        x2 = x_flat[:main].reshape(rows, _LANE)
        v2 = v_flat[:main].reshape(rows, _LANE)

    kind = _tpu_kind()
    is_v7 = ("v7" in kind) or ("tpu7" in kind)
    # 3 arrays x 2 pipeline buffers per block:
    #   v5e: 2 MiB blocks -> 12 MiB live (< 16 MiB scoped default)
    #   v6e/v7x: 4 MiB blocks -> 24 MiB live (< 32 MiB scoped default)
    max_block_bytes = (2 << 20) if "v5" in kind else (4 << 20)

    tr_cap = max(sub, (max_block_bytes // (_LANE * itemsize)) // sub * sub)
    if rows <= tr_cap:
        tr = rows           # single full-extent block (always a legal dim)
    else:
        tr = tr_cap         # multiple of `sub`; trailing partial block masked

    # v7x: make sure the "parallel" grid axis has >=2 steps so both
    # TensorCores issue DMAs.
    if is_v7 and rows > 2 * sub and pl.cdiv(rows, tr) < 2:
        tr = pl.cdiv(pl.cdiv(rows, 2), sub) * sub

    grid = (pl.cdiv(rows, tr),)

    out2 = pl.pallas_call(
        _linear_dynamics_kernel,
        out_shape=jax.ShapeDtypeStruct((rows, _LANE), out_dtype),
        grid_spec=pltpu.PrefetchScalarGridSpec(
            num_scalar_prefetch=1,   # `time` staged once in SMEM before the grid
            grid=grid,
            in_specs=[
                pl.BlockSpec((tr, _LANE), lambda i, t_ref: (i, 0)),  # x tile
                pl.BlockSpec((tr, _LANE), lambda i, t_ref: (i, 0)),  # v tile
            ],
            out_specs=pl.BlockSpec((tr, _LANE), lambda i, t_ref: (i, 0)),
        ),
        compiler_params=pltpu.CompilerParams(
            dimension_semantics=("parallel",),
        ),
    )(t, x2, v2)

    out_main = out2.reshape(-1)
    if tail == 0:
        return out_main.reshape(orig_shape)
    out_tail = (x_flat[main:] + v_flat[main:] * t[0]).astype(out_dtype)
    return jnp.concatenate([out_main, out_tail]).reshape(orig_shape)


if __name__ == "__main__":
    key = jax.random.PRNGKey(0)
    kx, kv = jax.random.split(key)

    # Deterministic parameter init matching nn.Parameter(torch.ones(1)).
    time_param = jnp.ones((1,), dtype=jnp.float32)

    # 1) Small NCHW-style state tensors (lane-aligned path), force Pallas.
    x = jax.random.normal(kx, (2, 4, 16, 16), dtype=jnp.float32)
    v = jax.random.normal(kv, (2, 4, 16, 16), dtype=jnp.float32)
    out = jax.block_until_ready(linear_dynamics(x, v, time_param, use_pallas=True))
    ref = x + v * time_param[0]
    assert out.shape == x.shape and out.dtype == ref.dtype
    assert jnp.allclose(out, ref, atol=1e-6, rtol=1e-6)

    # 2) Divisible by 128 but not by 1024 (relaxed-alignment path).
    kx2, kv2 = jax.random.split(kv)
    x2 = jax.random.normal(kx2, (3, 128), dtype=jnp.float32)
    v2 = jax.random.normal(kv2, (3, 128), dtype=jnp.float32)
    out2 = jax.block_until_ready(linear_dynamics(x2, v2, time_param, use_pallas=True))
    assert jnp.allclose(out2, x2 + v2 * time_param[0], atol=1e-6, rtol=1e-6)

    # 3) Not divisible by 128 (prefix kernel + jnp tail path).
    kx3, kv3 = jax.random.split(kx2)
    x3 = jax.random.normal(kx3, (3, 5, 17), dtype=jnp.float32)   # 255 elements
    v3 = jax.random.normal(kv3, (3, 5, 17), dtype=jnp.float32)
    out3 = jax.block_until_ready(linear_dynamics(x3, v3, time_param, use_pallas=True))
    assert jnp.allclose(out3, x3 + v3 * time_param[0], atol=1e-6, rtol=1e-6)

    print("KERNEL_OK")
</pallas_src>

<mosaic_0001>
module attributes {stable_mosaic.version = 11 : i64} {
  func.func @_linear_dynamics_kernel(%arg0: i32, %arg1: memref<1xf32, #tpu.memory_space<smem>>, %arg2: memref<16x128xf32, #tpu.memory_space<vmem>>, %arg3: memref<16x128xf32, #tpu.memory_space<vmem>>, %arg4: memref<16x128xf32, #tpu.memory_space<vmem>>) attributes {dimension_semantics = [#tpu.dimension_semantics<parallel>], iteration_bounds = array<i64: 1>, scalar_prefetch = 1 : i64, scratch_operands = 0 : i64, tpu.core_type = #tpu.core_type<tc>, window_params = [{transform_indices = @transform_0, window_bounds = array<i64: 16, 128>}, {transform_indices = @transform_1, window_bounds = array<i64: 16, 128>}, {transform_indices = @transform_2, window_bounds = array<i64: 16, 128>}]} {
    %c0 = arith.constant 0 : index
    %0 = memref.load %arg1[%c0] : memref<1xf32, #tpu.memory_space<smem>>
    %c0_0 = arith.constant 0 : index
    %c0_1 = arith.constant 0 : index
    %1 = vector.load %arg2[%c0_0, %c0_1] : memref<16x128xf32, #tpu.memory_space<vmem>>, vector<16x128xf32>
    %c0_2 = arith.constant 0 : index
    %c0_3 = arith.constant 0 : index
    %2 = vector.load %arg3[%c0_2, %c0_3] : memref<16x128xf32, #tpu.memory_space<vmem>>, vector<16x128xf32>
    %3 = vector.broadcast %0 : f32 to vector<16x128xf32>
    %4 = arith.mulf %2, %3 : vector<16x128xf32>
    %5 = arith.addf %1, %4 : vector<16x128xf32>
    %c0_4 = arith.constant 0 : index
    %c0_5 = arith.constant 0 : index
    %6 = vector.load %arg4[%c0_4, %c0_5] : memref<16x128xf32, #tpu.memory_space<vmem>>, vector<16x128xf32>
    tpu.vector_store %arg4[%c0_4, %c0_5], %5 {strides = array<i32>} : memref<16x128xf32, #tpu.memory_space<vmem>>, vector<16x128xf32>,
    return
  }
  func.func @transform_0(%arg0: i32, %arg1: memref<1xf32, #tpu.memory_space<smem>>) -> (i32, i32) {
    %c0_i32 = arith.constant 0 : i32
    %c0_i32_0 = arith.constant 0 : i32
    return %arg0, %c0_i32 : i32, i32
  }
  func.func @transform_1(%arg0: i32, %arg1: memref<1xf32, #tpu.memory_space<smem>>) -> (i32, i32) {
    %c0_i32 = arith.constant 0 : i32
    %c0_i32_0 = arith.constant 0 : i32
    return %arg0, %c0_i32 : i32, i32
  }
  func.func @transform_2(%arg0: i32, %arg1: memref<1xf32, #tpu.memory_space<smem>>) -> (i32, i32) {
    %c0_i32 = arith.constant 0 : i32
    %c0_i32_0 = arith.constant 0 : i32
    return %arg0, %c0_i32 : i32, i32
  }
}

</mosaic_0001>

<bundles_post_ra>
// kernel: tpu_custom_call.1
= control target key start
LH: loop header
LB: loop body
LE: loop exit
PB: predicated region body
PF: predicated region fallthrough
CT: control target
= control target key end

     0   :  { %9 = vsyncpa [#allocation5], 0  ;;  %s222_s0 = inlined_call_operand.<no memory space> [shape: f32[1], index: 0, kind: input, shape index: {}]   ;;  %s223_s1 = inlined_call_operand.hbm [shape: f32[16,128], index: 1, kind: input, shape index: {}]   ;;  %s224_s2 = inlined_call_operand.hbm [shape: f32[16,128], index: 2, kind: input, shape index: {}]   ;;  %s225_s3 = inlined_call_operand.hbm [shape: f32[16,128], index: 3, kind: output, shape index: {}]  }
   0x1   :  { %10 = vsyncpa [#allocation8], 0 }
   0x2   :  { %11 = vsyncpa [#allocation6], 0  ;;  %s149_s12 = smov [#allocation4]   ;;  %s77_s16 = scalar_lea.hbm %s223_s1, 256 }
   0x3   :  { %s17_s13 = sshll.u32 %s149_s12, 4  ;;  %p78_p0 = scmp.ne.s32.totalorder %s223_s1, %s77_s16  ;;  %s18_s13 = int_to_ptr.vmem [resolvable:$true] %s17_s13 }
   0x4   :  { %p81_p1 = scmp.lt.u32.totalorder %s77_s16, %s223_s1 }
   0x6   :  { %p83_p2 = pnand %p81_p1, %p78_p0 }
   0x8   :  { %86 = shalt.err (!%p83_p2)
}
   0x9   :  { %s87_s21 = scalar_lea.vmem %s18_s13, 256  ;;  %p92_p4 = scmp.lt.s32.totalorder %s18_s13, %s18_s13 }
   0xa   :  { %p88_p3 = scmp.ne.s32.totalorder %s18_s13, %s87_s21  ;;  %p93_p5 = scmp.lt.s32.totalorder %s87_s21, %s87_s21 }
   0xc   :  { %p94_p6 = por %p93_p5, %p92_p4 }
   0xe   :  { %p95_p7 = pnand %p94_p6, %p88_p3 }
  0x10   :  { %98 = shalt.err (!%p95_p7)
}
  0x11   :  { %s150_s22 = smov 128   ;;  %s151_s23 = smov 8  }
  0x12   :  { %23 = dma.hbm_to_vmem [thread:$0]  %s223_s1, 256, %s18_s13, [#allocation5], %s150_s22, %s150_s22, %s151_s23  }
  0x13   :  { %s152_s26 = smov [#allocation7]   ;;  %s99_s30 = scalar_lea.hbm %s224_s2, 256 }
  0x14   :  { %s29_s27 = sshll.u32 %s152_s26, 4  ;;  %p100_p8 = scmp.ne.s32.totalorder %s224_s2, %s99_s30  ;;  %s30_s27 = int_to_ptr.vmem [resolvable:$true] %s29_s27 }
  0x15   :  { %p103_p9 = scmp.lt.u32.totalorder %s99_s30, %s224_s2 }
  0x17   :  { %p105_p10 = pnand %p103_p9, %p100_p8 }
  0x19   :  { %108 = shalt.err (!%p105_p10)
}
  0x1a   :  { %s109_s8 = scalar_lea.vmem %s30_s27, 256  ;;  %p114_p12 = scmp.lt.s32.totalorder %s30_s27, %s30_s27 }
  0x1b   :  { %p110_p11 = scmp.ne.s32.totalorder %s30_s27, %s109_s8  ;;  %p115_p13 = scmp.lt.s32.totalorder %s109_s8, %s109_s8 }
  0x1d   :  { %p116_p0 = por %p115_p13, %p114_p12 }
  0x1f   :  { %p117_p1 = pnand %p116_p0, %p110_p11 }
  0x21   :  { %120 = shalt.err (!%p117_p1)
}
  0x22   :  { %35 = dma.hbm_to_vmem [thread:$0]  %s224_s2, 256, %s30_s27, [#allocation8], %s150_s22, %s150_s22, %s151_s23  }
  0x23   :  { %143 = dma.done.wait [#allocation5], 256  }
  0x24   :  { %144 = vsyncadd [#allocation5], 4294967040 }
  0x25   :  { %145 = dma.done.wait [#allocation8], 256  }
  0x26   :  { %146 = vsyncadd [#allocation8], 4294967040  ;;  %v47_v0 = vstv %s222_s0  ;;  %v43_v1 = vld [vmem:[#allocation4] sm:$0xff]  ;;  %v45_v2 = vld [vmem:[#allocation7] sm:$0xff]  ;;  %s153_s12 = smov [#allocation9]  }
  0x27   :  { %v48_v3 = vmul.f32 %v47_v0, %v45_v2  ;;  %v44_v4 = vld [vmem:[#allocation4 + $0x8] sm:$0xff]  ;;  %v46_v5 = vld [vmem:[#allocation7 + $0x8] sm:$0xff]  ;;  %s59_s13 = sshll.u32 %s153_s12, 4  ;;  %s60_s13 = int_to_ptr.vmem [resolvable:$true] %s59_s13 }
  0x28   :  { %v49_v6 = vmul.f32 %v47_v0, %v46_v5  ;;  %s121_s2 = scalar_lea.vmem %s60_s13, 256  ;;  %p126_p3 = scmp.lt.s32.totalorder %s60_s13, %s60_s13 }
  0x29   :  { %v50_v7 = vadd.f32 %v48_v3, %v43_v1  ;;  %p122_p2 = scmp.ne.s32.totalorder %s60_s13, %s121_s2  ;;  %p127_p4 = scmp.lt.s32.totalorder %s121_s2, %s121_s2 }
  0x2a   :  { %v51_v8 = vadd.f32 %v49_v6, %v44_v4 }
  0x2b   :  { %52 = vst [vmem:[#allocation9] sm:$0xff] %v50_v7  ;;  %p128_p5 = por %p127_p4, %p126_p3 }
  0x2c   :  { %53 = vst [vmem:[#allocation9 + $0x8] sm:$0xff] %v51_v8 }
  0x2d   :  { %p129_p6 = pnand %p128_p5, %p122_p2 }
  0x2f   :  { %132 = shalt.err (!%p129_p6)
}
  0x30   :  { %s133_s15 = scalar_lea.hbm %s225_s3, 256 }
  0x31   :  { %p134_p7 = scmp.ne.s32.totalorder %s225_s3, %s133_s15  ;;  %p137_p8 = scmp.lt.u32.totalorder %s133_s15, %s225_s3 }
  0x33   :  { %p139_p9 = pnand %p137_p8, %p134_p7 }
  0x35   :  { %142 = shalt.err (!%p139_p9)
}
  0x36   :  { %65 = dma.vmem_to_hbm [thread:$0]  %s60_s13, 256, %s225_s3, [#allocation6], %s150_s22, %s150_s22, %s151_s23  }
  0x37   :  { %147 = dma.done.wait [#allocation6], 256  }
  0x38   :  { %148 = vsyncadd [#allocation6], 4294967040 }
  0x39   :  { %69 = vsyncpa [#allocation5], 1 }
  0x3a   :  { %70 = vsyncpa [#allocation8], 1 }
  0x3b   :  { %71 = vsyncpa [#allocation6], 1 }

</bundles_post_ra>
